<compile_context>
chip_gen: v7x
topology: tpu7x:2x2x1
jax: 0.10.0
libtpu: 0.0.40
codegen_flags: <defaults>
</compile_context>

<pallas_src>
import functools
import math

import jax
import jax.numpy as jnp
from jax import lax
from jax.experimental import pallas as pl
from jax.experimental.pallas import tpu as pltpu


def _round_up(x, m):
    return ((x + m - 1) // m) * m


def _vmem_budget_bytes():
    """Returns (tile budget, vmem_limit_bytes) from the chip's physical VMEM."""
    cap = 64 * 1024 * 1024  # v7x per-TensorCore VMEM: most conservative default
    try:
        info = pltpu.get_tpu_info()
        c = int(getattr(info, "vmem_capacity_bytes", 0))
        if c > 0:
            cap = c          # 128 MiB on v5e/v6e, 64 MiB per TC on v7x
    except Exception:
        pass
    return (cap * 7) // 10, (cap * 17) // 20


def _choose_tiles(N, q_len, k_len, E, H, in_sz, out_sz, mm_sz, budget, causal):
    """VMEM-budget-driven (Nb, tq, tk) selection.

    Accounts for double-buffered q/k/v/out tiles, the resident fc_out weights,
    the 128-lane padding of the (.., tq, 1) / (.., tq, D) scratches and the
    live f32 energy/p intermediates of shape (Nb*H, tq, tk).  Prefers large tq
    (K/V are re-streamed q_len/tq times), tk in {128, 256} (lane dim of
    energy), and keeps >= 2 steps on the 'parallel' grid axes whenever the
    problem size admits it, so both v7x TensorCores stay busy.
    """
    D = E // H
    padD = _round_up(D, 128)
    padE = _round_up(E, 128)
    Qfull = _round_up(max(q_len, 1), 8)
    Kfull = _round_up(max(k_len, 1), 8)

    def est(Nb, tq, tk):
        tk_l = _round_up(tk, 128)
        b = 0
        b += 2 * Nb * tq * padE * in_sz            # Q tile (double-buffered)
        b += 2 * 2 * Nb * tk * padE * in_sz        # K and V tiles
        b += 2 * Nb * tq * padE * out_sz           # output tile
        if not causal:
            b += 2 * tq * tk_l * 4                 # additive-bias tile
        b += 2 * padE * padE * mm_sz               # fc_out weight (2 buffers)
        b += 2 * 8 * padE * 4                      # fc_out bias row
        b += 2 * Nb * H * tq * 128 * 4             # m, l scratch (lane-padded)
        b += Nb * H * tq * padD * 4                # f32 context accumulator
        b += Nb * H * tq * padD * mm_sz            # hoisted head-split Q
        b += 2 * Nb * H * tq * tk_l * 4            # live f32 energy / p temps
        b += 2 * 1024 * 1024                       # compiler-temp headroom
        return b

    tq_cands = ([Qfull] if Qfull <= 512 else []) + \
               [t for t in (512, 256, 128, 64, 32, 16, 8) if t < Qfull]
    # tk is the last (lane) dim of the bias block and of energy/p, so it must
    # be a multiple of 128 unless a single tile covers the whole key length.
    tk_cands = ([Kfull] if Kfull <= 256 else []) + \
               [t for t in (256, 128) if t < Kfull]
    nb_cands = [d for d in range(min(N, 8), 0, -1) if N % d == 0]

    def n_parallel(Nb, tq):
        return (N // Nb) * (_round_up(q_len, tq) // tq)

    can_par2 = n_parallel(1, tq_cands[-1]) >= 2
    for require_par2 in ((True, False) if can_par2 else (False,)):
        for tq in tq_cands:
            for tk in tk_cands:
                for Nb in nb_cands:
                    if require_par2 and n_parallel(Nb, tq) < 2:
                        continue
                    if est(Nb, tq, tk) <= budget:
                        return Nb, tq, tk
    return 1, tq_cands[-1], tk_cands[-1]   # nothing fits: minimal footprint


def _attn_kernel(*refs, embed_size, heads, causal, k_len, approx_recip,
                 mm_dtype):
    if causal:
        (q_ref, k_ref, v_ref, w_ref, b_ref, out_ref,
         m_scr, l_scr, acc_scr, qh_scr) = refs
        bias_ref = None
    else:
        (q_ref, k_ref, v_ref, bias_ref, w_ref, b_ref, out_ref,
         m_scr, l_scr, acc_scr, qh_scr) = refs

    H = heads
    D = embed_size // heads
    Nb, tq, E = q_ref.shape
    tk = k_ref.shape[1]
    qi = pl.program_id(1)
    ki = pl.program_id(2)

    # ---- once per (n, qi): init accumulators + hoisted Q preprocessing -----
    @pl.when(ki == 0)
    def _init():
        m_scr[...] = jnp.full(m_scr.shape, -jnp.inf, m_scr.dtype)
        l_scr[...] = jnp.zeros(l_scr.shape, l_scr.dtype)
        acc_scr[...] = jnp.zeros(acc_scr.shape, acc_scr.dtype)
        # Fold 1/sqrt(embed_size) into q and split heads once; this relayout
        # is constant across the K grid axis, so it is not repeated per tile.
        q = q_ref[...].astype(jnp.float32) * (1.0 / math.sqrt(embed_size))
        qh = q.reshape(Nb, tq, H, D).transpose(0, 2, 1, 3).reshape(Nb * H, tq, D)
        qh_scr[...] = qh.astype(mm_dtype)

    def _compute():
        k = k_ref[...]
        kh = (k.reshape(Nb, tk, H, D).transpose(0, 2, 1, 3)
              .reshape(Nb * H, tk, D)).astype(mm_dtype)
        # energy[bh, q, k] = sum_d qh[bh, q, d] * kh[bh, k, d]  (f32 accum)
        energy = lax.dot_general(
            qh_scr[...], kh, (((2,), (2,)), ((0,), (0,))),
            preferred_element_type=jnp.float32)            # (Nb*H, tq, tk)

        if causal:
            q_pos = qi * tq + lax.broadcasted_iota(jnp.int32, (tq, tk), 0)
            k_pos = ki * tk + lax.broadcasted_iota(jnp.int32, (tq, tk), 1)
            ok = (k_pos <= q_pos) & (k_pos < k_len)
            energy = jnp.where(ok[None, :, :], energy, jnp.float32(-1e20))
        else:
            # Single additive bias (0 / -1e20) shared across batch & heads.
            energy = energy + bias_ref[...][None, :, :]

        # ---- online softmax (all f32) -------------------------------------
        m_prev = m_scr[...]
        m_new = jnp.maximum(m_prev, jnp.max(energy, axis=-1, keepdims=True))
        alpha = jnp.exp(m_prev - m_new)
        p = jnp.exp(energy - m_new)
        l_scr[...] = alpha * l_scr[...] + jnp.sum(p, axis=-1, keepdims=True)

        v = v_ref[...]
        vh = (v.reshape(Nb, tk, H, D).transpose(0, 2, 1, 3)
              .reshape(Nb * H, tk, D)).astype(mm_dtype)
        pv = lax.dot_general(
            p.astype(mm_dtype), vh, (((2,), (1,)), ((0,), (0,))),
            preferred_element_type=jnp.float32)            # (Nb*H, tq, D)
        acc_scr[...] = alpha * acc_scr[...] + pv
        m_scr[...] = m_new

    if causal:
        # Skip K tiles that lie entirely above the diagonal for this Q tile.
        pl.when(ki * tk <= qi * tq + (tq - 1))(_compute)
    else:
        _compute()

    # ---- finalize on the last K step: normalize, merge heads, fc_out -------
    @pl.when(ki == pl.num_programs(2) - 1)
    def _finalize():
        l = l_scr[...]
        inv_l = pl.reciprocal(l, approx=True) if approx_recip else 1.0 / l
        ctx = acc_scr[...] * inv_l                         # (Nb*H, tq, D) f32
        ctx = (ctx.reshape(Nb, H, tq, D).transpose(0, 2, 1, 3)
               .reshape(Nb * tq, H * D))
        y = lax.dot_general(
            ctx.astype(mm_dtype), w_ref[...], (((1,), (0,)), ((), ())),
            preferred_element_type=jnp.float32)            # (Nb*tq, E), lane-dense
        y = y + b_ref[...].astype(jnp.float32)
        out_ref[...] = y.reshape(Nb, tq, E).astype(out_ref.dtype)


def self_attention(values, keys, query, mask, w_out, b_out, *,
                   embed_size, heads, causal=False, prefer_bf16_matmul=False):
    """Forward pass of muPPIt SelfAttention (matches the torch module).

    causal=True generates the mask in-kernel and skips fully-masked K tiles;
    prefer_bf16_matmul=True runs the matmuls in bf16 with f32 accumulation.
    """
    N, q_len, E = query.shape
    k_len = keys.shape[1]
    v_len = values.shape[1]
    assert E == embed_size, "query embedding dim must equal embed_size"
    assert embed_size % heads == 0
    assert keys.shape[-1] == E and values.shape[-1] == E
    assert v_len == k_len, "attention requires key_len == value_len"
    H = heads
    D = E // H

    in_dtype = query.dtype
    out_dtype = query.dtype
    mm_dtype = jnp.bfloat16 if prefer_bf16_matmul else in_dtype
    # EUP approximate reciprocal only when the output is bf16; exact for f32.
    approx_recip = (jnp.dtype(out_dtype) == jnp.dtype(jnp.bfloat16))

    budget, vmem_limit = _vmem_budget_bytes()
    Nb, tq, tk = _choose_tiles(
        N, q_len, k_len, E, H,
        jnp.dtype(in_dtype).itemsize, jnp.dtype(out_dtype).itemsize,
        jnp.dtype(mm_dtype).itemsize, budget, causal)

    Qp = _round_up(q_len, tq)
    Kp = _round_up(k_len, tk)

    def pad_seq(x, L):
        return x if x.shape[1] == L else jnp.pad(
            x, ((0, 0), (0, L - x.shape[1]), (0, 0)))

    q_in = pad_seq(query, Qp)
    k_in = pad_seq(keys, Kp)
    v_in = pad_seq(values, Kp)

    # fc_out: PyTorch Linear stores W as (E_out, E_in); pre-transpose once so
    # the kernel does a plain (.., H*D) @ (H*D, E) matmul with E lane-dense.
    w_t = jnp.transpose(w_out).astype(mm_dtype)            # (H*D, E)
    b2 = b_out.reshape(1, E).astype(jnp.float32)

    q_spec = pl.BlockSpec((Nb, tq, E), lambda n, qi, ki: (n, qi, 0))
    k_spec = pl.BlockSpec((Nb, tk, E), lambda n, qi, ki: (n, ki, 0))
    v_spec = pl.BlockSpec((Nb, tk, E), lambda n, qi, ki: (n, ki, 0))
    w_spec = pl.BlockSpec((E, E), lambda n, qi, ki: (0, 0))      # resident
    b_spec = pl.BlockSpec((1, E), lambda n, qi, ki: (0, 0))      # resident
    out_spec = pl.BlockSpec((Nb, tq, E), lambda n, qi, ki: (n, qi, 0))

    if causal:
        in_specs = [q_spec, k_spec, v_spec, w_spec, b_spec]
        args = (q_in, k_in, v_in, w_t, b2)
    else:
        # Shared (Q, K) additive-bias plane; the (N, H, Q, K) broadcast is
        # never materialized.  Note: for a fully-masked row with padded keys
        # the uniform-softmax fallback averages over the padded length.
        if mask is None:
            m2 = jnp.ones((q_len, k_len), jnp.int32)
        else:
            m = jnp.asarray(mask)
            assert m.ndim >= 2, "mask must have at least 2 dims"
            assert all(d == 1 for d in m.shape[:-2]), (
                "per-batch / per-head masks are not supported: mask must be "
                "shared across N and heads")
            m2 = jnp.broadcast_to(m.reshape(m.shape[-2], m.shape[-1]),
                                  (q_len, k_len))
        bias = jnp.where(m2 == 0, jnp.float32(-1e20), jnp.float32(0.0))
        # Padded key columns masked out; padded query rows are sliced off.
        bias = jnp.pad(bias, ((0, Qp - q_len), (0, Kp - k_len)),
                       constant_values=-1e20)
        bias_spec = pl.BlockSpec((tq, tk), lambda n, qi, ki: (qi, ki))
        in_specs = [q_spec, k_spec, v_spec, bias_spec, w_spec, b_spec]
        args = (q_in, k_in, v_in, bias, w_t, b2)

    kernel = functools.partial(
        _attn_kernel, embed_size=embed_size, heads=heads, causal=causal,
        k_len=k_len, approx_recip=approx_recip, mm_dtype=mm_dtype)

    out = pl.pallas_call(
        kernel,
        out_shape=jax.ShapeDtypeStruct((N, Qp, E), out_dtype),
        grid_spec=pltpu.PrefetchScalarGridSpec(
            num_scalar_prefetch=0,
            grid=(N // Nb, Qp // tq, Kp // tk),
            in_specs=in_specs,
            out_specs=out_spec,
            scratch_shapes=[
                pltpu.VMEM((Nb * H, tq, 1), jnp.float32),   # running max m
                pltpu.VMEM((Nb * H, tq, 1), jnp.float32),   # running sum l
                pltpu.VMEM((Nb * H, tq, D), jnp.float32),   # unnormalized ctx
                pltpu.VMEM((Nb * H, tq, D), mm_dtype),      # hoisted split Q
            ]),
        compiler_params=pltpu.CompilerParams(
            dimension_semantics=("parallel", "parallel", "arbitrary"),
            vmem_limit_bytes=int(vmem_limit)),
    )(*args)

    return out[:, :q_len, :] if Qp != q_len else out


def _reference(values, keys, query, mask, w_out, b_out, embed_size, heads):
    # Pure-JAX transcription of the PyTorch forward, at HIGHEST precision.
    N, q_len, E = query.shape
    D = E // heads
    hi = lax.Precision.HIGHEST
    q = query.reshape(N, q_len, heads, D)
    k = keys.reshape(N, keys.shape[1], heads, D)
    v = values.reshape(N, values.shape[1], heads, D)
    energy = jnp.einsum('nqhd,nkhd->nhqk', q, k, precision=hi)
    if mask is not None:
        energy = jnp.where(mask == 0, -1e20, energy)
    attn = jax.nn.softmax(energy / (embed_size ** 0.5), axis=3)
    out = jnp.einsum('nhql,nlhd->nqhd', attn, v, precision=hi)
    out = out.reshape(N, q_len, heads * D)
    return jnp.matmul(out, w_out.T, precision=hi) + b_out


if __name__ == "__main__":
    N, seq, embed_size, heads = 2, 8, 32, 4

    key = jax.random.PRNGKey(0)
    kq, kk, kv, kw, kb = jax.random.split(key, 5)

    query = jax.random.normal(kq, (N, seq, embed_size), dtype=jnp.float32)
    keys_ = jax.random.normal(kk, (N, seq, embed_size), dtype=jnp.float32)
    values = jax.random.normal(kv, (N, seq, embed_size), dtype=jnp.float32)

    # fc_out parameters (nn.Linear(embed, embed): W (E_out, E_in), b (E,)).
    w_out = jax.random.normal(kw, (embed_size, embed_size),
                              dtype=jnp.float32) * (1.0 / embed_size ** 0.5)
    b_out = jax.random.normal(kb, (embed_size,), dtype=jnp.float32) * 0.1

    # Causal mask, broadcastable to (N, H, Q, K) like the torch mask.
    mask = jnp.tril(jnp.ones((seq, seq), dtype=jnp.int32))[None, None]

    ref = _reference(values, keys_, query, mask, w_out, b_out,
                     embed_size, heads)

    # General (streamed additive-bias mask) path.
    out = self_attention(values, keys_, query, mask, w_out, b_out,
                         embed_size=embed_size, heads=heads)
    out = jax.block_until_ready(out)
    assert out.shape == (N, seq, embed_size)

    # Causal fast path (in-kernel mask, fully-masked K tiles skipped).
    out_causal = self_attention(values, keys_, query, None, w_out, b_out,
                                embed_size=embed_size, heads=heads,
                                causal=True)
    out_causal = jax.block_until_ready(out_causal)

    # Tolerance: the backend's DEFAULT-precision f32 matmuls round through the
    # bf16 MXU and the kernel/reference accumulate in different orders, so
    # per-element errors up to a few 1e-2 are expected (the reference itself
    # is computed at HIGHEST precision); structural bugs would be O(1).
    assert jnp.allclose(out, ref, rtol=5e-2, atol=5e-2), \
        "mismatch vs reference (general mask path)"
    assert jnp.allclose(out_causal, ref, rtol=5e-2, atol=5e-2), \
        "mismatch vs reference (causal path)"

    print("KERNEL_OK")
</pallas_src>

<mosaic_0001>
module attributes {stable_mosaic.version = 11 : i64} {
  func.func @_attn_kernel(%arg0: i32, %arg1: i32, %arg2: i32, %arg3: memref<1x8x32xf32, #tpu.memory_space<vmem>>, %arg4: memref<1x8x32xf32, #tpu.memory_space<vmem>>, %arg5: memref<1x8x32xf32, #tpu.memory_space<vmem>>, %arg6: memref<8x8xf32, #tpu.memory_space<vmem>>, %arg7: memref<32x32xf32, #tpu.memory_space<vmem>>, %arg8: memref<1x32xf32, #tpu.memory_space<vmem>>, %arg9: memref<1x8x32xf32, #tpu.memory_space<vmem>>, %arg10: memref<4x8x1xf32, #tpu.memory_space<vmem>>, %arg11: memref<4x8x1xf32, #tpu.memory_space<vmem>>, %arg12: memref<4x8x8xf32, #tpu.memory_space<vmem>>, %arg13: memref<4x8x8xf32, #tpu.memory_space<vmem>>) attributes {dimension_semantics = [#tpu.dimension_semantics<parallel>, #tpu.dimension_semantics<parallel>, #tpu.dimension_semantics<arbitrary>], iteration_bounds = array<i64: 2, 1, 1>, scalar_prefetch = 0 : i64, scratch_operands = 4 : i64, tpu.core_type = #tpu.core_type<tc>, window_params = [{transform_indices = @transform_0, window_bounds = array<i64: 1, 8, 32>}, {transform_indices = @transform_1, window_bounds = array<i64: 1, 8, 32>}, {transform_indices = @transform_2, window_bounds = array<i64: 1, 8, 32>}, {transform_indices = @transform_3, window_bounds = array<i64: 8, 8>}, {pipeline_mode = #tpu.pipeline_mode<synchronous>, transform_indices = @transform_4, window_bounds = array<i64: 32, 32>}, {pipeline_mode = #tpu.pipeline_mode<synchronous>, transform_indices = @transform_5, window_bounds = array<i64: 1, 32>}, {transform_indices = @transform_6, window_bounds = array<i64: 1, 8, 32>}]} {
    %c0_i32 = arith.constant 0 : i32
    %0 = arith.cmpi eq, %arg2, %c0_i32 : i32
    %1 = arith.extui %0 : i1 to i32
    %c0_i32_0 = arith.constant 0 : i32
    %2 = arith.cmpi ne, %1, %c0_i32_0 : i32
    scf.if %2 {
      %cst_34 = arith.constant 0xFF800000 : f32
      %42 = vector.broadcast %cst_34 : f32 to vector<4x8x1xf32>
      %c0_35 = arith.constant 0 : index
      %c0_36 = arith.constant 0 : index
      %c0_37 = arith.constant 0 : index
      %43 = vector.load %arg10[%c0_35, %c0_36, %c0_37] : memref<4x8x1xf32, #tpu.memory_space<vmem>>, vector<4x8x1xf32>
      tpu.vector_store %arg10[%c0_35, %c0_36, %c0_37], %42 {strides = array<i32>} : memref<4x8x1xf32, #tpu.memory_space<vmem>>, vector<4x8x1xf32>,
      %cst_38 = arith.constant 0.000000e+00 : f32
      %44 = vector.broadcast %cst_38 : f32 to vector<4x8x1xf32>
      %c0_39 = arith.constant 0 : index
      %c0_40 = arith.constant 0 : index
      %c0_41 = arith.constant 0 : index
      %45 = vector.load %arg11[%c0_39, %c0_40, %c0_41] : memref<4x8x1xf32, #tpu.memory_space<vmem>>, vector<4x8x1xf32>
      tpu.vector_store %arg11[%c0_39, %c0_40, %c0_41], %44 {strides = array<i32>} : memref<4x8x1xf32, #tpu.memory_space<vmem>>, vector<4x8x1xf32>,
      %cst_42 = arith.constant 0.000000e+00 : f32
      %46 = vector.broadcast %cst_42 : f32 to vector<4x8x8xf32>
      %c0_43 = arith.constant 0 : index
      %c0_44 = arith.constant 0 : index
      %c0_45 = arith.constant 0 : index
      %47 = vector.load %arg12[%c0_43, %c0_44, %c0_45] : memref<4x8x8xf32, #tpu.memory_space<vmem>>, vector<4x8x8xf32>
      tpu.vector_store %arg12[%c0_43, %c0_44, %c0_45], %46 {strides = array<i32>} : memref<4x8x8xf32, #tpu.memory_space<vmem>>, vector<4x8x8xf32>,
      %c0_46 = arith.constant 0 : index
      %c0_47 = arith.constant 0 : index
      %c0_48 = arith.constant 0 : index
      %48 = vector.load %arg3[%c0_46, %c0_47, %c0_48] : memref<1x8x32xf32, #tpu.memory_space<vmem>>, vector<1x8x32xf32>
      %cst_49 = arith.constant 0.176776692 : f32
      %49 = vector.broadcast %cst_49 : f32 to vector<1x8x32xf32>
      %50 = arith.mulf %48, %49 : vector<1x8x32xf32>
      %51 = vector.shape_cast %50 : vector<1x8x32xf32> to vector<1x8x4x8xf32>
      %52 = tpu.transpose %51, [0, 2, 1, 3] : vector<1x8x4x8xf32> -> vector<1x4x8x8xf32>
      %53 = vector.shape_cast %52 : vector<1x4x8x8xf32> to vector<4x8x8xf32>
      %c0_50 = arith.constant 0 : index
      %c0_51 = arith.constant 0 : index
      %c0_52 = arith.constant 0 : index
      %54 = vector.load %arg13[%c0_50, %c0_51, %c0_52] : memref<4x8x8xf32, #tpu.memory_space<vmem>>, vector<4x8x8xf32>
      tpu.vector_store %arg13[%c0_50, %c0_51, %c0_52], %53 {strides = array<i32>} : memref<4x8x8xf32, #tpu.memory_space<vmem>>, vector<4x8x8xf32>,
    } else {
    }
    %c0 = arith.constant 0 : index
    %c0_1 = arith.constant 0 : index
    %c0_2 = arith.constant 0 : index
    %3 = vector.load %arg4[%c0, %c0_1, %c0_2] : memref<1x8x32xf32, #tpu.memory_space<vmem>>, vector<1x8x32xf32>
    %4 = vector.shape_cast %3 : vector<1x8x32xf32> to vector<1x8x4x8xf32>
    %5 = tpu.transpose %4, [0, 2, 1, 3] : vector<1x8x4x8xf32> -> vector<1x4x8x8xf32>
    %6 = vector.shape_cast %5 : vector<1x4x8x8xf32> to vector<4x8x8xf32>
    %c0_3 = arith.constant 0 : index
    %c0_4 = arith.constant 0 : index
    %c0_5 = arith.constant 0 : index
    %7 = vector.load %arg13[%c0_3, %c0_4, %c0_5] : memref<4x8x8xf32, #tpu.memory_space<vmem>>, vector<4x8x8xf32>
    %cst = arith.constant dense<0.000000e+00> : vector<4x8x8xf32>
    %8 = tpu.matmul %7, %6, %cst {dimension_numbers = #tpu.dot_dimension_numbers<[2], [2], [1], [1], [0, 0, 0, 1, 1, 1], [0], [0]>} : vector<4x8x8xf32>, vector<4x8x8xf32>, vector<4x8x8xf32> -> vector<4x8x8xf32>
    %c0_6 = arith.constant 0 : index
    %c0_7 = arith.constant 0 : index
    %9 = vector.load %arg6[%c0_6, %c0_7] : memref<8x8xf32, #tpu.memory_space<vmem>>, vector<8x8xf32>
    %10 = vector.shape_cast %9 : vector<8x8xf32> to vector<1x8x8xf32>
    %11 = vector.broadcast %10 : vector<1x8x8xf32> to vector<4x8x8xf32>
    %12 = arith.addf %8, %11 : vector<4x8x8xf32>
    %c0_8 = arith.constant 0 : index
    %c0_9 = arith.constant 0 : index
    %c0_10 = arith.constant 0 : index
    %13 = vector.load %arg10[%c0_8, %c0_9, %c0_10] : memref<4x8x1xf32, #tpu.memory_space<vmem>>, vector<4x8x1xf32>
    %cst_11 = arith.constant dense<0xFF800000> : vector<4x8xf32>
    %14 = vector.multi_reduction <maximumf>, %12, %cst_11 [2] : vector<4x8x8xf32> to vector<4x8xf32>
    %15 = vector.shape_cast %14 : vector<4x8xf32> to vector<4x8x1xf32>
    %16 = arith.maximumf %13, %15 : vector<4x8x1xf32>
    %17 = arith.subf %13, %16 : vector<4x8x1xf32>
    %18 = math.exp %17 : vector<4x8x1xf32>
    %19 = vector.broadcast %16 : vector<4x8x1xf32> to vector<4x8x8xf32>
    %20 = arith.subf %12, %19 : vector<4x8x8xf32>
    %21 = math.exp %20 : vector<4x8x8xf32>
    %c0_12 = arith.constant 0 : index
    %c0_13 = arith.constant 0 : index
    %c0_14 = arith.constant 0 : index
    %22 = vector.load %arg11[%c0_12, %c0_13, %c0_14] : memref<4x8x1xf32, #tpu.memory_space<vmem>>, vector<4x8x1xf32>
    %23 = arith.mulf %18, %22 : vector<4x8x1xf32>
    %cst_15 = arith.constant dense<0.000000e+00> : vector<4x8xf32>
    %24 = vector.multi_reduction <add>, %21, %cst_15 [2] : vector<4x8x8xf32> to vector<4x8xf32>
    %25 = vector.shape_cast %24 : vector<4x8xf32> to vector<4x8x1xf32>
    %26 = arith.addf %23, %25 : vector<4x8x1xf32>
    %c0_16 = arith.constant 0 : index
    %c0_17 = arith.constant 0 : index
    %c0_18 = arith.constant 0 : index
    %27 = vector.load %arg11[%c0_16, %c0_17, %c0_18] : memref<4x8x1xf32, #tpu.memory_space<vmem>>, vector<4x8x1xf32>
    tpu.vector_store %arg11[%c0_16, %c0_17, %c0_18], %26 {strides = array<i32>} : memref<4x8x1xf32, #tpu.memory_space<vmem>>, vector<4x8x1xf32>,
    %c0_19 = arith.constant 0 : index
    %c0_20 = arith.constant 0 : index
    %c0_21 = arith.constant 0 : index
    %28 = vector.load %arg5[%c0_19, %c0_20, %c0_21] : memref<1x8x32xf32, #tpu.memory_space<vmem>>, vector<1x8x32xf32>
    %29 = vector.shape_cast %28 : vector<1x8x32xf32> to vector<1x8x4x8xf32>
    %30 = tpu.transpose %29, [0, 2, 1, 3] : vector<1x8x4x8xf32> -> vector<1x4x8x8xf32>
    %31 = vector.shape_cast %30 : vector<1x4x8x8xf32> to vector<4x8x8xf32>
    %cst_22 = arith.constant dense<0.000000e+00> : vector<4x8x8xf32>
    %32 = tpu.matmul %21, %31, %cst_22 {dimension_numbers = #tpu.dot_dimension_numbers<[2], [1], [1], [2], [0, 0, 0, 1, 1, 2], [0], [0]>} : vector<4x8x8xf32>, vector<4x8x8xf32>, vector<4x8x8xf32> -> vector<4x8x8xf32>
    %c0_23 = arith.constant 0 : index
    %c0_24 = arith.constant 0 : index
    %c0_25 = arith.constant 0 : index
    %33 = vector.load %arg12[%c0_23, %c0_24, %c0_25] : memref<4x8x8xf32, #tpu.memory_space<vmem>>, vector<4x8x8xf32>
    %34 = vector.broadcast %18 : vector<4x8x1xf32> to vector<4x8x8xf32>
    %35 = arith.mulf %34, %33 : vector<4x8x8xf32>
    %36 = arith.addf %35, %32 : vector<4x8x8xf32>
    %c0_26 = arith.constant 0 : index
    %c0_27 = arith.constant 0 : index
    %c0_28 = arith.constant 0 : index
    %37 = vector.load %arg12[%c0_26, %c0_27, %c0_28] : memref<4x8x8xf32, #tpu.memory_space<vmem>>, vector<4x8x8xf32>
    tpu.vector_store %arg12[%c0_26, %c0_27, %c0_28], %36 {strides = array<i32>} : memref<4x8x8xf32, #tpu.memory_space<vmem>>, vector<4x8x8xf32>,
    %c0_29 = arith.constant 0 : index
    %c0_30 = arith.constant 0 : index
    %c0_31 = arith.constant 0 : index
    %38 = vector.load %arg10[%c0_29, %c0_30, %c0_31] : memref<4x8x1xf32, #tpu.memory_space<vmem>>, vector<4x8x1xf32>
    tpu.vector_store %arg10[%c0_29, %c0_30, %c0_31], %16 {strides = array<i32>} : memref<4x8x1xf32, #tpu.memory_space<vmem>>, vector<4x8x1xf32>,
    %c0_i32_32 = arith.constant 0 : i32
    %39 = arith.cmpi eq, %arg2, %c0_i32_32 : i32
    %40 = arith.extui %39 : i1 to i32
    %c0_i32_33 = arith.constant 0 : i32
    %41 = arith.cmpi ne, %40, %c0_i32_33 : i32
    scf.if %41 {
      %c0_34 = arith.constant 0 : index
      %c0_35 = arith.constant 0 : index
      %c0_36 = arith.constant 0 : index
      %42 = vector.load %arg11[%c0_34, %c0_35, %c0_36] : memref<4x8x1xf32, #tpu.memory_space<vmem>>, vector<4x8x1xf32>
      %cst_37 = arith.constant 1.000000e+00 : f32
      %43 = vector.broadcast %cst_37 : f32 to vector<4x8x1xf32>
      %44 = arith.divf %43, %42 : vector<4x8x1xf32>
      %c0_38 = arith.constant 0 : index
      %c0_39 = arith.constant 0 : index
      %c0_40 = arith.constant 0 : index
      %45 = vector.load %arg12[%c0_38, %c0_39, %c0_40] : memref<4x8x8xf32, #tpu.memory_space<vmem>>, vector<4x8x8xf32>
      %46 = vector.broadcast %44 : vector<4x8x1xf32> to vector<4x8x8xf32>
      %47 = arith.mulf %45, %46 : vector<4x8x8xf32>
      %48 = vector.shape_cast %47 : vector<4x8x8xf32> to vector<1x4x8x8xf32>
      %49 = tpu.transpose %48, [0, 2, 1, 3] : vector<1x4x8x8xf32> -> vector<1x8x4x8xf32>
      %50 = vector.shape_cast %49 : vector<1x8x4x8xf32> to vector<8x32xf32>
      %c0_41 = arith.constant 0 : index
      %c0_42 = arith.constant 0 : index
      %51 = vector.load %arg7[%c0_41, %c0_42] : memref<32x32xf32, #tpu.memory_space<vmem>>, vector<32x32xf32>
      %cst_43 = arith.constant dense<0.000000e+00> : vector<8x32xf32>
      %52 = tpu.matmul %50, %51, %cst_43 {dimension_numbers = #tpu.dot_dimension_numbers<[1], [0], [0], [1], [0, 0, 1, 1], [], []>} : vector<8x32xf32>, vector<32x32xf32>, vector<8x32xf32> -> vector<8x32xf32>
      %c0_44 = arith.constant 0 : index
      %c0_45 = arith.constant 0 : index
      %53 = vector.load %arg8[%c0_44, %c0_45] : memref<1x32xf32, #tpu.memory_space<vmem>>, vector<1x32xf32>
      %54 = vector.broadcast %53 : vector<1x32xf32> to vector<8x32xf32>
      %55 = arith.addf %52, %54 : vector<8x32xf32>
      %56 = vector.shape_cast %55 : vector<8x32xf32> to vector<1x8x32xf32>
      %c0_46 = arith.constant 0 : index
      %c0_47 = arith.constant 0 : index
      %c0_48 = arith.constant 0 : index
      %57 = vector.load %arg9[%c0_46, %c0_47, %c0_48] : memref<1x8x32xf32, #tpu.memory_space<vmem>>, vector<1x8x32xf32>
      tpu.vector_store %arg9[%c0_46, %c0_47, %c0_48], %56 {strides = array<i32>} : memref<1x8x32xf32, #tpu.memory_space<vmem>>, vector<1x8x32xf32>,
    } else {
    }
    return
  }
  func.func @transform_0(%arg0: i32, %arg1: i32, %arg2: i32) -> (i32, i32, i32) {
    %c0_i32 = arith.constant 0 : i32
    %c0_i32_0 = arith.constant 0 : i32
    return %arg0, %arg1, %c0_i32 : i32, i32, i32
  }
  func.func @transform_1(%arg0: i32, %arg1: i32, %arg2: i32) -> (i32, i32, i32) {
    %c0_i32 = arith.constant 0 : i32
    %c0_i32_0 = arith.constant 0 : i32
    return %arg0, %arg2, %c0_i32 : i32, i32, i32
  }
  func.func @transform_2(%arg0: i32, %arg1: i32, %arg2: i32) -> (i32, i32, i32) {
    %c0_i32 = arith.constant 0 : i32
    %c0_i32_0 = arith.constant 0 : i32
    return %arg0, %arg2, %c0_i32 : i32, i32, i32
  }
  func.func @transform_3(%arg0: i32, %arg1: i32, %arg2: i32) -> (i32, i32) {
    %c0_i32 = arith.constant 0 : i32
    return %arg1, %arg2 : i32, i32
  }
  func.func @transform_4(%arg0: i32, %arg1: i32, %arg2: i32) -> (i32, i32) {
    %c0_i32 = arith.constant 0 : i32
    %c0_i32_0 = arith.constant 0 : i32
    %c0_i32_1 = arith.constant 0 : i32
    return %c0_i32, %c0_i32_0 : i32, i32
  }
  func.func @transform_5(%arg0: i32, %arg1: i32, %arg2: i32) -> (i32, i32) {
    %c0_i32 = arith.constant 0 : i32
    %c0_i32_0 = arith.constant 0 : i32
    %c0_i32_1 = arith.constant 0 : i32
    return %c0_i32, %c0_i32_0 : i32, i32
  }
  func.func @transform_6(%arg0: i32, %arg1: i32, %arg2: i32) -> (i32, i32, i32) {
    %c0_i32 = arith.constant 0 : i32
    %c0_i32_0 = arith.constant 0 : i32
    return %arg0, %arg1, %c0_i32 : i32, i32, i32
  }
}

</mosaic_0001>

<bundles_post_ra>
// kernel: tpu_custom_call.1
= control target key start
LH: loop header
LB: loop body
LE: loop exit
PB: predicated region body
PF: predicated region fallthrough
CT: control target
= control target key end

     0   :  { %s3095_s0 = inlined_call_operand.hbm [shape: f32[2,8,32], index: 0, kind: input, shape index: {}]   ;;  %s3096_s1 = inlined_call_operand.hbm [shape: f32[2,8,32], index: 1, kind: input, shape index: {}]   ;;  %s3097_s2 = inlined_call_operand.hbm [shape: f32[2,8,32], index: 2, kind: input, shape index: {}]   ;;  %s3098_s3 = inlined_call_operand.vmem [shape: f32[8,8], index: 3, kind: input, shape index: {}]   ;;  %s3099_s4 = inlined_call_operand.hbm [shape: f32[32,32], index: 4, kind: input, shape index: {}]   ;;  %s3100_s5 = inlined_call_operand.vmem [shape: f32[1,32], index: 5, kind: input, shape index: {}]   ;;  %s3101_s6 = inlined_call_operand.hbm [shape: f32[2,8,32], index: 6, kind: output, shape index: {}]  }
   0x1   :  { %3121 = sst [smem:[#allocation26_spill]] %s3096_s1 }
   0x2   :  { %3122 = sst [smem:[#allocation27_spill]] %s3100_s5 }
   0x3   :  { %3123 = sst [smem:[#allocation28_spill]] %s3101_s6 }
   0x4   :  { %11 = vsyncpa [#allocation7], 0 }
   0x5   :  { %13 = vsyncpa [#allocation7 + $0x1], 0 }
   0x6   :  { %14 = vsyncpa [#allocation10], 0 }
   0x7   :  { %16 = vsyncpa [#allocation10 + $0x1], 0 }
   0x8   :  { %17 = vsyncpa [#allocation13], 0 }
   0x9   :  { %18 = vsyncpa [#allocation8], 0 }
   0xa   :  { %20 = vsyncpa [#allocation8 + $0x1], 0  ;;  %s2574_s21 = smov 0   ;;  %s2576_s22 = smov 0  }
   0xb   :  { %s2578_s23 = smov 0   ;;  %s2580_s24 = smov 0  }
   0xc   :  { %s2582_s25 = smov 0   ;;  %s2584_s26 = smov 0  }
   0xd LB: > { %3124 = sst [smem:[#allocation19_spill]] %s2497_s21  ;;  %s45_s27 = sadd.s32 1, %s2513_s25  ;;  %s2517_s26 = sphi %s2584_s26, %s26_s26   ;;  %s2513_s25 = sphi %s2582_s25, %s3159_s25   ;;  %s2509_s24 = sphi %s2580_s24, %s3158_s24   ;;  %s2505_s23 = sphi %s2578_s23, %s3162_s23   ;;  %s2501_s22 = sphi %s2576_s22, %s3161_s22   ;;  %s2497_s21 = sphi %s2574_s21, %s3160_s21  }
   0xe   : > { %3125 = sst [smem:[#allocation20_spill]] %s2513_s25  ;;  %s54_s28 = sadd.s32 1, %s2505_s23 }
   0xf   : > { %3126 = sst [smem:[#allocation21_spill]] %s2517_s26  ;;  %p47_p0 = scmp.ge.s32.totalorder %s45_s27, 2 }
  0x10   : > { %p3102_p1 = scmp.ne.s32.totalorder %s2505_s23, %s2501_s22  ;;  %p62_p2 = scmp.eq.s32.totalorder %s2517_s26, 0 }
  0x11   : > { %s3164_s27 = smov (%p47_p0, %s45_s27), 0  ;;  %p2216_p5 = scmp.lt.s32.totalorder %s2517_s26, 2 }
  0x12   : > { %3127 = sst [smem:[#allocation22_spill]] %s3164_s27  ;;  %p63_p4 = por %p62_p2, %p3102_p1 }
  0x13   : > { %s49_s29 = ssub.s32 %s2513_s25, %s3164_s27  ;;  %s3103_s30 = sand.u32 1, %s2505_s23  }
  0x14   : > { %p52_p6 = scmp.eq.s32.totalorder %s49_s29, 0  ;;  %s2621_s7 = sshll.u32 %s3103_s30, 3 }
  0x15   : > { %s2624_s8 = sshll.u32 %s2513_s25, 7  ;;  %p2626_p7 = pnand %p2216_p5, %p63_p4 }
  0x16   : > { %s2631_s10 = scalar_select %p52_p6, %s2505_s23, %s54_s28  }
  0x17   : > { %s3128_s9 = scalar_select %p2626_p7, 1, 0 }
  0x18   : > { %3129 = sst [smem:[#allocation23_spill]] %s2631_s10  ;;  %s290_s11 = sand.u32 1, %s2517_s26  }
  0x19   : > { %s3130_s1 = sld [smem:[#allocation26_spill]]  ;;  %s294_s15 = scalar_lea.vmem [#allocation9], %s2621_s7 }
  0x1a   : > { %s302_s16 = sshll.u32 %s294_s15, 4  ;;  %s2643_s17 = scalar_lea.sflag [#allocation10], %s290_s11  ;;  %s2641_s16 = int_to_ptr.vmem [resolvable:$true] %s302_s16 }
  0x1b   : > { %p2649_p9 = pneg %p2626_p7 }
  0x1d   : > { %s3131_s19 = scalar_select %p2649_p9, 1, 0 }
  0x1f   : > { %s2638_s14 = scalar_lea.hbm %s3130_s1, %s2624_s8  ;;  %s2314_s29 = scalar_lea.hbm %s3130_s1, 256 }
  0x20   : > { %s2309_s18 = scalar_lea.hbm %s2638_s14, 128  ;;  %p2315_p12 = scmp.lt.u32.totalorder %s2638_s14, %s3130_s1 }
  0x21   : > { %p2310_p8 = scmp.ne.s32.totalorder %s2638_s14, %s2309_s18  ;;  %p2316_p13 = scmp.lt.u32.totalorder %s2314_s29, %s2309_s18 }
  0x22   : > { %p2318_p2 = scmp.lt.u32.totalorder %s2309_s18, %s2638_s14 }
  0x23   : > { %p2312_p10 = pnand %p2649_p9, %p2310_p8  ;;  %p2317_p0 = por %p2316_p13, %p2315_p12 }
  0x25   : > { %p2313_p11 = pneg %p2312_p10  ;;  %p2319_p4 = por %p2318_p2, %p2317_p0 }
  0x27   : > { %p2320_p5 = pnand %p2319_p4, %p2313_p11 }
  0x29   : > { %2323 = shalt.err (!%p2320_p5)
}
  0x2a   : > { %s2324_s11 = scalar_lea.vmem %s2641_s16, 128  ;;  %s2519_s15 = smov [#allocation9]  }
  0x2b   : > { %p2325_p6 = scmp.ne.s32.totalorder %s2641_s16, %s2324_s11  ;;  %s2329_s20 = sshll.u32 %s2519_s15, 4  ;;  %s2330_s20 = int_to_ptr.vmem [resolvable:$false] %s2329_s20 }
  0x2c   : > { %s2331_s28 = scalar_lea.vmem %s2330_s20, 256  ;;  %p2332_p3 = scmp.lt.s32.totalorder %s2641_s16, %s2330_s20 }
  0x2d   : > { %p2327_p8 = pnand %p2325_p6, %p2649_p9  ;;  %p2333_p1 = scmp.lt.s32.totalorder %s2331_s28, %s2324_s11 }
  0x2f   : > { %p2328_p10 = pneg %p2327_p8  ;;  %p2334_p12 = por %p2333_p1, %p2332_p3 }
  0x31   : > { %p2335_p13 = pnand %p2334_p12, %p2328_p10 }
  0x33   : > { %2338 = shalt.err (!%p2335_p13)
}
  0x34   : > { %2207 = dma.hbm_to_vmem [thread:$0]  (!%p2626_p7), %s2638_s14, 128, %s2641_s16, %s2643_s17  }
  0x35   : > { %s2674_s18 = sadd.s32 4294967295, %s2517_s26   ;;  %s2064_s29 = sadd.s32 4294967294, %s2517_s26  }
  0x36   : > { %p67_p1 = scmp.ne.s32.totalorder %s2501_s22, %s2497_s21  ;;  %p3109_p3 = scmp.eq.s32.totalorder %s2674_s18, 0 }
  0x37   : > { %p219_p11 = scmp.eq.s32.totalorder %s2674_s18, 1  ;;  %p225_p0 = scmp.eq.s32.totalorder %s2064_s29, 1 }
  0x38   : > { %p2065_p2 = scmp.ge.s32.totalorder %s2517_s26, 1  ;;  %p2684_p4 = por %p3109_p3, %p67_p1 }
  0x39   : > { %p3133_p5 = scmp.ne.s32.totalorder %s2505_s23, %s2501_s22  ;;  %p2695_p8 = por %p225_p0, %p67_p1 }
  0x3a   : > { %s3132_s12 = scalar_select %p2684_p4, 1, 0 }
  0x3b   : > { %p2691_p6 = por %p219_p11, %p3133_p5  ;;  %p232_p10 = scmp.lt.s32.totalorder %s2517_s26, 3 }
  0x3c   : > { %s3136_s16 = scalar_select %p2695_p8, 1, 0 }
  0x3d   : > { %s3134_s14 = scalar_select %p2691_p6, 1, 0 }
  0x3e   : > { %3137 = sst [smem:[#allocation25_spill]] %s3136_s16  ;;  %p2700_p12 = pnand %p2065_p2, %p232_p10 }
  0x3f   : > { %3135 = sst [smem:[#allocation24_spill]] %s3134_s14  ;;  %s2520_s11 = smov [#allocation12]  }
  0x40   : > { %s3138_s13 = scalar_select %p2700_p12, 1, 0 }
  0x41   : > { %s254_s15 = sshll.u32 %s2520_s11, 4  ;;  %p2197_p13 = pneg %p2700_p12  ;;  %s2704_s15 = int_to_ptr.vmem [resolvable:$true] %s254_s15 }
  0x42   : > { %s2718_s30 = scalar_lea.hbm %s3095_s0, %s2624_s8  ;;  %s275_s1 = scalar_lea.vmem [#allocation6], %s2621_s7 }
  0x43   : > { %p2710_p11 = pnand %p2197_p13, %p3109_p3  ;;  %s283_s27 = sshll.u32 %s275_s1, 4  ;;  %s2721_s27 = int_to_ptr.vmem [resolvable:$true] %s283_s27 }
  0x44   : > { %s2339_s10 = scalar_lea.hbm %s3099_s4, 512 }
  0x45   : > { %p2340_p1 = scmp.ne.s32.totalorder %s3099_s4, %s2339_s10  ;;  %p2341_p0 = pneg %p2710_p11 }
  0x46   : > { %p2346_p10 = scmp.lt.u32.totalorder %s2339_s10, %s3099_s4 }
  0x47   : > { %p2342_p2 = pnand %p2341_p0, %p2340_p1 }
  0x49   : > { %p2343_p5 = pneg %p2342_p2 }
  0x4b   : > { %p2348_p13 = pnand %p2346_p10, %p2343_p5 }
  0x4d   : > { %2351 = shalt.err (!%p2348_p13)
}
  0x4e   : > { %s2352_s1 = scalar_lea.vmem %s2704_s15, 512  ;;  %p2360_p4 = scmp.lt.s32.totalorder %s2704_s15, %s2704_s15 }
  0x4f   : > { %p2353_p3 = scmp.ne.s32.totalorder %s2704_s15, %s2352_s1  ;;  %p2361_p12 = scmp.lt.s32.totalorder %s2352_s1, %s2352_s1 }
  0x51   : > { %p2355_p8 = pnand %p2353_p3, %p2341_p0  ;;  %p2362_p7 = por %p2361_p12, %p2360_p4 }
  0x53   : > { %p2356_p6 = pneg %p2355_p8 }
  0x55   : > { %p2363_p9 = pnand %p2362_p7, %p2356_p6 }
  0x57   : > { %2366 = shalt.err (!%p2363_p9)
}
  0x58   : > { %s2521_s25 = smov 128   ;;  %s2522_s26 = smov 8  }
  0x59   : > { %2200 = dma.hbm_to_vmem [thread:$0]  (!%p2710_p11), %s3099_s4, 512, %s2704_s15, [#allocation13], %s2521_s25, %s2521_s25, %s2522_s26  }
  0x5a   : > { %s3140_s11 = sand.u32 1, %s2505_s23   ;;  %s2367_s29 = scalar_lea.hbm %s2718_s30, 128 }
  0x5b   : > { %s272_s28 = scalar_lea.sflag [#allocation7], %s3140_s11  ;;  %p2368_p7 = scmp.ne.s32.totalorder %s2718_s30, %s2367_s29 }
  0x5c   : > { %p3141_p9 = scmp.ne.s32.totalorder %s3131_s19, 0  ;;  %s2372_s6 = scalar_lea.hbm %s3095_s0, 256 }
  0x5d   : > { %p2373_p6 = scmp.lt.u32.totalorder %s2718_s30, %s3095_s0  ;;  %p2374_p8 = scmp.lt.u32.totalorder %s2372_s6, %s2367_s29 }
  0x5e   : > { %p2370_p3 = pnand %p2368_p7, %p3141_p9  ;;  %p2376_p1 = scmp.lt.u32.totalorder %s2367_s29, %s2718_s30 }
  0x5f   : > { %p2375_p12 = por %p2374_p8, %p2373_p6 }
  0x60   : > { %p2371_p4 = pneg %p2370_p3 }
  0x61   : > { %p2377_p0 = por %p2376_p1, %p2375_p12 }
  0x63   : > { %p2378_p11 = pnand %p2377_p0, %p2371_p4 }
  0x65   : > { %2381 = shalt.err (!%p2378_p11)
}
  0x66   : > { %s2382_s15 = scalar_lea.vmem %s2721_s27, 128  ;;  %s2523_s21 = smov [#allocation6]  }
  0x67   : > { %p2383_p2 = scmp.ne.s32.totalorder %s2721_s27, %s2382_s15  ;;  %s2387_s20 = sshll.u32 %s2523_s21, 4  ;;  %s2388_s20 = int_to_ptr.vmem [resolvable:$false] %s2387_s20 }
  0x68   : > { %s2389_s5 = scalar_lea.vmem %s2388_s20, 256  ;;  %p2390_p13 = scmp.lt.s32.totalorder %s2721_s27, %s2388_s20 }
  0x69   : > { %p2385_p5 = pnand %p2383_p2, %p3141_p9  ;;  %p2391_p7 = scmp.lt.s32.totalorder %s2389_s5, %s2382_s15 }
  0x6b   : > { %p2386_p10 = pneg %p2385_p5  ;;  %p2392_p3 = por %p2391_p7, %p2390_p13 }
  0x6d   : > { %p2393_p6 = pnand %p2392_p3, %p2386_p10 }
  0x6f   : > { %2396 = shalt.err (!%p2393_p6)
}
  0x70   : > { %p3142_p4 = scmp.ne.s32.totalorder %s3128_s9, 0  ;;  %s2771_s25 = scalar_lea.hbm %s3097_s2, %s2624_s8 }
  0x71   : > { %s313_s26 = scalar_lea.vmem [#allocation11], %s2621_s7  ;;  %s2397_s16 = scalar_lea.hbm %s2771_s25, 128 }
  0x72   : > { %2204 = dma.hbm_to_vmem [thread:$0]  (!%p3142_p4), %s2718_s30, 128, %s2721_s27, %s272_s28  }
  0x73   : > { %s321_s10 = sshll.u32 %s313_s26, 4  ;;  %p2398_p8 = scmp.ne.s32.totalorder %s2771_s25, %s2397_s16  ;;  %s322_s10 = int_to_ptr.vmem [resolvable:$true] %s321_s10 }
  0x74   : > { %s2402_s27 = scalar_lea.hbm %s3097_s2, 256  ;;  %p2403_p0 = scmp.lt.u32.totalorder %s2771_s25, %s3097_s2 }
  0x75   : > { %p2400_p12 = pnand %p2398_p8, %p3141_p9  ;;  %p2404_p11 = scmp.lt.u32.totalorder %s2402_s27, %s2397_s16 }
  0x76   : > { %p2406_p5 = scmp.lt.u32.totalorder %s2397_s16, %s2771_s25 }
  0x77   : > { %p2401_p1 = pneg %p2400_p12  ;;  %p2405_p2 = por %p2404_p11, %p2403_p0 }
  0x79   : > { %p2407_p10 = por %p2406_p5, %p2405_p2 }
  0x7b   : > { %p2408_p13 = pnand %p2407_p10, %p2401_p1 }
  0x7d   : > { %2411 = shalt.err (!%p2408_p13)
}
  0x7e   : > { %s2412_s7 = scalar_lea.vmem %s322_s10, 128  ;;  %s2524_s8 = smov [#allocation11]  }
  0x7f   : > { %p2413_p7 = scmp.ne.s32.totalorder %s322_s10, %s2412_s7  ;;  %s2417_s1 = sshll.u32 %s2524_s8, 4  ;;  %s2418_s1 = int_to_ptr.vmem [resolvable:$false] %s2417_s1 }
  0x80   : > { %s2419_s15 = scalar_lea.vmem %s2418_s1, 256  ;;  %p2420_p8 = scmp.lt.s32.totalorder %s322_s10, %s2418_s1 }
  0x81   : > { %p2415_p3 = pnand %p2413_p7, %p3141_p9  ;;  %p2421_p12 = scmp.lt.s32.totalorder %s2419_s15, %s2412_s7 }
  0x83   : > { %p2416_p6 = pneg %p2415_p3  ;;  %p2422_p4 = por %p2421_p12, %p2420_p8 }
  0x85   : > { %p2423_p0 = pnand %p2422_p4, %p2416_p6 }
  0x87   : > { %2426 = shalt.err (!%p2423_p0)
}
  0x88   : > { %p3143_p11 = scmp.ne.s32.totalorder %s3128_s9, 0  ;;  %p3144_p1 = scmp.ne.s32.totalorder %s3138_s13, 0 }
  0x89   : > { %s2795_s19 = sand.u32 (!%p3144_p1), 1, %s2501_s22   ;;  %p3145_p9 = scmp.ne.s32.totalorder (!%p3144_p1), %s3132_s12, 0 }
  0x8a   : > { %2210 = dma.hbm_to_vmem [thread:$0]  (!%p3143_p11), %s2771_s25, 128, %s322_s10, %s2643_s17  }
  0x8b   : > { %330 = sbr.rel (%p3144_p1) target bundleno = 1485 (0x5cd), region = 44  ;;  %s2798_s21 = sshll.u32 (!%p3144_p1), %s2795_s19, 3 }
  0x8c   : > { %s333_s20 = scalar_lea.sflag (!%p3144_p1), [#allocation7], %s2795_s19  ;;  %s336_s5 = scalar_lea.vmem (!%p3144_p1), [#allocation6], %s2798_s21 }
  0x92   : > { %2480 = dma.done.wait (%p3145_p9), %s333_s20, 128  }
  0x93   : > { %2482 = vsyncadd (%p3145_p9), %s333_s20, 4294967168  ;;  %s341_s9 = sand.u32 1, %s2674_s18   ;;  %s345_s13 = scalar_lea.vmem [#allocation9], %s2798_s21 }
  0x94   : > { %s342_s17 = scalar_lea.sflag [#allocation10], %s341_s9 }
  0x95   : > { %2484 = dma.done.wait (%p3145_p9), %s342_s17, 256  }
  0x96   : > { %2486 = vsyncadd (%p3145_p9), %s342_s17, 4294967040  ;;  %s354_s6 = scalar_lea.vmem [#allocation11], %s2798_s21  ;;  %p3146_p4 = scmp.eq.s32.totalorder %s2674_s18, 0 }
  0x98   : > { %2488 = dma.done.wait (%p3146_p4), [#allocation13], 512   ;;  %p3147_p2 = pmov %p3146_p4 }
  0x99   : > { %v429_v0 = vld [vmem:[%s336_s5] sm:$0xff]  ;;  %s2525_s14 = smov 104   ;;  %s2526_s25 = smov 120   ;;  %v581_v2 = vld [vmem:[%s345_s13] sm:$0xff]  ;;  %vm424_vm0 = vcmask 64512   ;;  %v2528_v3 = vmov 0.0   ;;  %v446_v6 = vlaneseq }
  0x9a   : > { %2490 = vsyncadd (%p3147_p2), [#allocation13], 4294966784  ;;  %v430_v1 = vmul.f32 0.17677669, %v429_v0  ;;  %s2527_s12 = smov 112   ;;  %2128 = vmatprep.subr.mxu1 %v2528_v3  ;;  %425 = vst.msk [vmem:[#allocation4] sm:$0xff] %vm424_vm0, %v2528_v3  ;;  %2138 = vmatprep.subr.mxu0 %v2528_v3 }
  0x9b   : > { %426 = vst.msk [vmem:[#allocation4 + $0x8] sm:$0xff] %vm424_vm0, %v2528_v3  ;;  %427 = vst.msk [vmem:[#allocation4 + $0x10] sm:$0xff] %vm424_vm0, %v2528_v3  ;;  %vm2529_vm1 = vmmov 0   ;;  %v2530_v4 = vmov 1983009808   ;;  %v447_v10 = vshrl.u32 %v446_v6, 7 }
  0x9c   : > { %438 = vrot.lane.b32.xlu1 %v430_v1, %s2525_s14  ;;  %432 = vrot.lane.b32.xlu0 %v430_v1, %s2526_s25  ;;  %428 = vst.msk [vmem:[#allocation4 + $0x18] sm:$0xff] %vm424_vm0, %v2528_v3  ;;  %v444_v5 = vunpack.c.l.s4 %v2530_v4  ;;  %v2531_v7 = vmov 1934713408   ;;  %vm415_vm2 = vcmask 7168   ;;  %s2535_s10 = smov 16   ;;  %s2536_s16 = smov 8  }
  0x9d   : > { %2130 = vmatprep.mubr.msk.f32.mxu1 %vm2529_vm1, %v2528_v3  ;;  %2140 = vmatprep.mubr.msk.f32.mxu0 %vm2529_vm1, %v2528_v3  ;;  %v476_v8 = vunpack.c.l.s4 %v2531_v7  ;;  %420 = vst.msk [vmem:[#allocation3] sm:$0xff] %vm415_vm2, %v2528_v3  ;;  %421 = vst.msk [vmem:[#allocation3 + $0x8] sm:$0xff] %vm415_vm2, %v2528_v3  ;;  %s2537_s11 = smov 24   ;;  %vm1802_vm3 = vcmask 130048   ;;  %vm1804_vm4 = vcmask 195584   ;;  %vm1817_vm5 = vcmask 261120  }
  0x9e   : > { %v445_v9 = vunpack.c.0.s8 %v444_v5  ;;  %422 = vst.msk [vmem:[#allocation3 + $0x10] sm:$0xff] %vm415_vm2, %v2528_v3  ;;  %423 = vst.msk [vmem:[#allocation3 + $0x18] sm:$0xff] %vm415_vm2, %v2528_v3  ;;  %s3148_s29 = sld [smem:[#allocation24_spill]]  ;;  %s3149_s28 = sld [smem:[#allocation27_spill]] }
  0x9f   : > { %v477_v13 = vunpack.c.0.s8 %v476_v8  ;;  %s2104_s7 = sshll.u32 %s2509_s24, 7  ;;  %s403_s8 = scalar_lea.vmem [#allocation14], %s2798_s21 }
  0xa0   : > { %583 = vrot.lane.b32.xlu1 %v581_v2, %s2526_s25  ;;  %435 = vrot.lane.b32.xlu0 %v430_v1, %s2527_s12  ;;  %v2837_v14 = vsub.s32 %v445_v9, %v447_v10  ;;  %s1907_s1 = sshll.u32 %s403_s8, 4  ;;  %s3150_s5 = sld [smem:[#allocation28_spill]]  ;;  %s3048_s1 = int_to_ptr.vmem [resolvable:$true] %s1907_s1 }
  0xa1   : > { %v2839_v21 = vsub.s32 %v477_v13, %v447_v10  ;;  %s1893_s17 = scalar_lea.sflag [#allocation8], %s2795_s19  ;;  %s2427_s13 = scalar_lea.vmem %s3048_s1, 128 }
  0xa2   : > { %p2428_p5 = scmp.ne.s32.totalorder %s3048_s1, %s2427_s13  ;;  %s2538_s24 = smov [#allocation14]  }
  0xa3   : > { %s2431_s21 = sshll.u32 %s2538_s24, 4  ;;  %s2432_s21 = int_to_ptr.vmem [resolvable:$false] %s2431_s21 }
  0xa4   : > { %589 = vrot.lane.b32.xlu1 %v581_v2, %s2525_s14  ;;  %586 = vrot.lane.b32.xlu0 %v581_v2, %s2527_s12  ;;  %p3151_p10 = scmp.ne.s32.totalorder %s3148_s29, 0  ;;  %p2434_p3 = scmp.lt.s32.totalorder %s3048_s1, %s2432_s21 }
  0xa6   : > { %s3046_s9 = scalar_lea.hbm %s3150_s5, %s2104_s7  ;;  %p2429_p13 = pnand %p2428_p5, %p3151_p10 }
  0xa8   : > { %p2430_p7 = pneg %p2429_p13 }
 0x10e   : > { %v439_v11 = vpop.permute.xlu1 %438  ;;  %v433_v12 = vpop.permute.xlu0 %432 }
 0x10f   : > { %v457_v15 = vcombine.low %v433_v12, %v439_v11  ;;  %v458_v16 = vcombine.high %v433_v12, %v439_v11 }
 0x111   : > { %v465_v22 = vrot.slane %v457_v15, %v2837_v14  ;;  %v472_v23 = vrot.slane %v458_v16, %v2837_v14 }
 0x112   : > { %v584_v17 = vpop.permute.xlu1 %583  ;;  %v436_v18 = vpop.permute.xlu0 %435 }
 0x113   : > { %v441_v19 = vcombine.low %v430_v1, %v436_v18  ;;  %v442_v20 = vcombine.high %v430_v1, %v436_v18 }
 0x115   : > { %v449_v24 = vrot.slane %v441_v19, %v2837_v14  ;;  %v456_v25 = vrot.slane %v442_v20, %v2837_v14 }
 0x116   : > { %v590_v26 = vpop.permute.xlu1 %589  ;;  %v587_v27 = vpop.permute.xlu0 %586 }
 0x117   : > { %v473_v28 = vcombine.low %v449_v24, %v465_v22  ;;  %v474_v29 = vcombine.high %v449_v24, %v465_v22  ;;  %v489_v30 = vcombine.low %v456_v25, %v472_v23  ;;  %v490_v31 = vcombine.high %v456_v25, %v472_v23 }
 0x118   : > { %v608_v32 = vcombine.low %v584_v17, %v590_v26  ;;  %v609_v33 = vcombine.high %v584_v17, %v590_v26  ;;  %v592_v34 = vcombine.low %v581_v2, %v587_v27  ;;  %v593_v35 = vcombine.high %v581_v2, %v587_v27 }
 0x119   : > { %v481_v36 = vrot.slane %v473_v28, %v2839_v21  ;;  %v488_v37 = vrot.slane %v474_v29, %v2839_v21  ;;  %v497_v38 = vrot.slane %v489_v30, %v2839_v21  ;;  %v504_v39 = vrot.slane %v490_v31, %v2839_v21 }
 0x11a   : > { %v616_v40 = vrot.slane %v608_v32, %v2837_v14  ;;  %v623_v41 = vrot.slane %v609_v33, %v2837_v14  ;;  %v600_v42 = vrot.slane %v592_v34, %v2837_v14  ;;  %v607_v43 = vrot.slane %v593_v35, %v2837_v14 }
 0x11b   : > { %v509_v44 = vcombine.low %v481_v36, %v488_v37  ;;  %v2081_v45 = vcombine.high %v481_v36, %v488_v37  ;;  %v525_v46 = vcombine.low %v497_v38, %v504_v39  ;;  %v2082_v47 = vcombine.high %v497_v38, %v504_v39  ;;  %v732_v36 = vld [vmem:[%s3098_s3] sm:$0xff] }
 0x11c   : > { %v624_v48 = vcombine.low %v600_v42, %v616_v40  ;;  %v625_v49 = vcombine.high %v600_v42, %v616_v40  ;;  %v640_v50 = vcombine.low %v607_v43, %v623_v41  ;;  %v641_v51 = vcombine.high %v607_v43, %v623_v41 }
 0x11d   : > { %v516_v52 = vrot.slane %v509_v44, %v2837_v14  ;;  %v524_v53 = vrot.slane %v2081_v45, %v2837_v14  ;;  %v532_v54 = vrot.slane %v525_v46, %v2837_v14  ;;  %v540_v55 = vrot.slane %v2082_v47, %v2837_v14 }
 0x11e   : > { %v632_v56 = vrot.slane %v624_v48, %v2839_v21  ;;  %v639_v57 = vrot.slane %v625_v49, %v2839_v21  ;;  %v648_v58 = vrot.slane %v640_v50, %v2839_v21  ;;  %v655_v59 = vrot.slane %v641_v51, %v2839_v21 }
 0x11f   : > { %v541_v60 = vcombine.low %v516_v52, %v524_v53  ;;  %v542_v61 = vcombine.high %v516_v52, %v524_v53  ;;  %v557_v62 = vcombine.low %v532_v54, %v540_v55  ;;  %v558_v63 = vcombine.high %v532_v54, %v540_v55 }
 0x120   : > { %v660_v0 = vcombine.low %v632_v56, %v639_v57  ;;  %v2083_v1 = vcombine.high %v632_v56, %v639_v57  ;;  %v676_v2 = vcombine.low %v648_v58, %v655_v59  ;;  %v2084_v4 = vcombine.high %v648_v58, %v655_v59 }
 0x121   : > { %v549_v5 = vrot.slane %v541_v60, %v2839_v21  ;;  %v556_v6 = vrot.slane %v542_v61, %v2839_v21  ;;  %v565_v7 = vrot.slane %v557_v62, %v2839_v21  ;;  %v572_v8 = vrot.slane %v558_v63, %v2839_v21  ;;  %v1131_v62 = vld [vmem:[%s354_s6] sm:$0xff]  ;;  %s2433_s6 = scalar_lea.vmem %s2432_s21, 256 }
 0x122   : > { %v667_v9 = vrot.slane %v660_v0, %v2837_v14  ;;  %v675_v10 = vrot.slane %v2083_v1, %v2837_v14  ;;  %v683_v11 = vrot.slane %v676_v2, %v2837_v14  ;;  %v691_v12 = vrot.slane %v2084_v4, %v2837_v14  ;;  %p2435_p6 = scmp.lt.s32.totalorder %s2433_s6, %s2427_s13 }
 0x123   : > { %v573_v13 = vcombine.low %v549_v5, %v565_v7  ;;  %v574_v15 = vcombine.high %v549_v5, %v565_v7  ;;  %v575_v16 = vcombine.low %v556_v6, %v572_v8  ;;  %v576_v17 = vcombine.high %v556_v6, %v572_v8 }
 0x124   : > { %v692_v18 = vcombine.low %v667_v9, %v675_v10  ;;  %v708_v19 = vcombine.low %v683_v11, %v691_v12  ;;  %v693_v20 = vcombine.high %v667_v9, %v675_v10  ;;  %v709_v22 = vcombine.high %v683_v11, %v691_v12  ;;  %p2436_p8 = por %p2435_p6, %p2434_p3 }
 0x125   : > { %577 = vst.msk [vmem:[#allocation5] sm:$0xff] %vm424_vm0, %v573_v13  ;;  %578 = vst.msk [vmem:[#allocation5 + $0x8] sm:$0xff] %vm424_vm0, %v574_v15  ;;  %v2532_v35 = vmov -inf   ;;  %v2533_v53 = vmov 0  }
 0x126   : > { %579 = vst.msk [vmem:[#allocation5 + $0x10] sm:$0xff] %vm424_vm0, %v575_v16  ;;  %580 = vst.msk [vmem:[#allocation5 + $0x18] sm:$0xff] %vm424_vm0, %v576_v17  ;;  %v700_v23 = vrot.slane %v692_v18, %v2839_v21  ;;  %v716_v24 = vrot.slane %v708_v19, %v2839_v21  ;;  %v707_v25 = vrot.slane %v693_v20, %v2839_v21  ;;  %2283 = vset.pattern.permute.xlu1 %v2533_v53  ;;  %p2437_p12 = pnand %p2436_p8, %p2430_p7 }
 0x127   : > { %v723_v26 = vrot.slane %v709_v22, %v2839_v21  ;;  %416 = vst.msk [vmem:[#allocation2] sm:$0xff] %vm415_vm2, %v2532_v35  ;;  %417 = vst.msk [vmem:[#allocation2 + $0x8] sm:$0xff] %vm415_vm2, %v2532_v35  ;;  %2284 = vset.pattern.permute.xlu0 %v2533_v53 }
 0x128   : > { %v724_v27 = vcombine.low %v700_v23, %v716_v24  ;;  %v725_v29 = vcombine.high %v700_v23, %v716_v24  ;;  %418 = vst.msk [vmem:[#allocation2 + $0x10] sm:$0xff] %vm415_vm2, %v2532_v35  ;;  %419 = vst.msk [vmem:[#allocation2 + $0x18] sm:$0xff] %vm415_vm2, %v2532_v35 }
 0x129   : > { %v726_v28 = vcombine.low %v707_v25, %v723_v26  ;;  %v727_v32 = vcombine.high %v707_v25, %v723_v26 }
 0x12a   : > { %2129 = vmatpush3.xpose.msk.msra.mxu1 %vm424_vm0, %v724_v27 }
 0x12b   : > { %2139 = vmatpush3.xpose.msk.msra.mxu0 %vm424_vm0, %v726_v28  ;;  %2133 = vmatprep.subr.mxu1 %v2528_v3 }
 0x12c   : > { %2148 = vmatprep.subr.mxu0 %v2528_v3  ;;  %v728_v30 = vld [vmem:[#allocation5] sm:$0xff]  ;;  %v729_v33 = vld [vmem:[#allocation5 + $0x8] sm:$0xff] }
 0x12d   : > { %v730_v31 = vld [vmem:[#allocation5 + $0x10] sm:$0xff]  ;;  %2131 = vmatmul.mubr.msk.f32.vlgmr.msra.gmra.mrb[0].mxu1 %vm424_vm0, %v728_v30  ;;  %v731_v34 = vld [vmem:[#allocation5 + $0x18] sm:$0xff] }
 0x12e   : > { %2141 = vmatmul.mubr.msk.f32.vlgmr.msra.gmra.mrb[0].mxu0 %vm424_vm0, %v730_v31  ;;  %2134 = vmatpush3.xpose.msk.msra.mxu1 %vm424_vm0, %v725_v29  ;;  %v2922_v54 = vld [vmem:[#allocation2] sm:$0xff]  ;;  %v2929_v58 = vld [vmem:[#allocation2 + $0x8] sm:$0xff] }
 0x12f   : > { %2135 = vmatprep.mubr.msk.f32.mxu1 %vm2529_vm1, %v2528_v3  ;;  %2143 = vmatprep.subr.mxu1 %v2528_v3  ;;  %v2927_v57 = vld [vmem:[#allocation2 + $0x10] sm:$0xff]  ;;  %v2944_v1 = vld [vmem:[#allocation2 + $0x18] sm:$0xff] }
 0x130   : > { %2150 = vmatprep.mubr.msk.f32.mxu0 %vm2529_vm1, %v2528_v3 }
 0x131   : > { %2136 = vmatmul.mubr.msk.f32.vlgmr.msra.gmra.mrb[2].mxu1 %vm424_vm0, %v729_v33 }
 0x132   : > { %2144 = vmatpush3.xpose.msk.msra.mxu1 %vm424_vm0, %v727_v32  ;;  %2145 = vmatprep.mubr.msk.f32.mxu1 %vm2529_vm1, %v2528_v3 }
 0x133   : > { %2153 = vmatprep.subr.mxu1 %v2528_v3 }
 0x135   : > { %2146 = vmatmul.mubr.msk.f32.vlgmr.msra.gmra.mrb[4].mxu1 %vm424_vm0, %v731_v34 }
 0x136   : > { %2155 = vmatprep.mubr.msk.f32.mxu1 %vm2529_vm1, %v2528_v3 }
 0x200   : > { %v806_v37 = vpop.f32.mrb[0].mxu1 }
 0x201   : > { %v958_v38 = vpop.f32.mrb[0].mxu0  ;;  %v807_v39 = vadd.f32 %v806_v37, %v732_v36  ;;  %v2132_v40 = vpop.f32.mrb[1].mxu1 }
 0x202   : > { %v2142_v41 = vpop.f32.mrb[1].mxu0  ;;  %v2912_v42 = vadd.f32 %v958_v38, %v732_v36 }
 0x203   : > { %v1042_v43 = vsel %vm424_vm0, %v807_v39, -inf }
 0x204   : > { %1043 = vmax.xlane.f32.xlu0 %v1042_v43  ;;  %v882_v44 = vpop.f32.mrb[2].mxu1  ;;  %v1048_v47 = vsel %vm424_vm0, %v2912_v42, -inf }
 0x205   : > { %v883_v45 = vadd.f32 %v882_v44, %v732_v36  ;;  %v2137_v46 = vpop.f32.mrb[3].mxu1 }
 0x207   : > { %v1045_v48 = vsel %vm424_vm0, %v883_v45, -inf }
 0x208   : > { %1049 = vmax.xlane.f32.xlu0 %v1048_v47  ;;  %1046 = vmax.xlane.f32.xlu1 %v1045_v48  ;;  %v1034_v49 = vpop.f32.mrb[4].mxu1 }
 0x209   : > { %v2918_v50 = vadd.f32 %v1034_v49, %v732_v36  ;;  %v2147_v51 = vpop.f32.mrb[5].mxu1 }
 0x20b   : > { %v1051_v52 = vsel %vm424_vm0, %v2918_v50, -inf }
 0x20c   : > { %1052 = vmax.xlane.f32.xlu0 %v1051_v52 }
 0x291   : > { %v1044_v55 = vpop.xlane.xlu0 %1043 }
 0x292   : > { %v2925_v56 = vmax.f32 %v2922_v54, %v1044_v55 }
 0x294   : > { %v1058_v59 = vsub.f32 %v2922_v54, %v2925_v56  ;;  %1606 = vst.msk [vmem:[#allocation2] sm:$0xff] %vm415_vm2, %v2925_v56  ;;  %1072 = vperm.xlu1 %2283, %v2925_v56  }
 0x295   : > { %v1050_v60 = vpop.xlane.xlu0 %1049  ;;  %v1047_v61 = vpop.xlane.xlu1 %1046 }
 0x296   : > { %v2939_v63 = vmax.f32 %v2927_v57, %v1050_v60  ;;  %v2942_v0 = vmax.f32 %v2929_v58, %v1047_v61 }
 0x298   : > { %v1060_v2 = vsub.f32 %v2927_v57, %v2939_v63  ;;  %1608 = vst.msk [vmem:[#allocation2 + $0x10] sm:$0xff] %vm415_vm2, %v2939_v63  ;;  %v1059_v4 = vsub.f32 %v2929_v58, %v2942_v0  ;;  %1607 = vst.msk [vmem:[#allocation2 + $0x8] sm:$0xff] %vm415_vm2, %v2942_v0  ;;  %1077 = vperm.xlu0 %2284, %v2942_v0   ;;  %1133 = vrot.lane.b32.xlu1 %v1131_v62, %s2526_s25 }
 0x299   : > { %v1053_v5 = vpop.xlane.xlu0 %1052 }
 0x29a   : > { %v2957_v6 = vmax.f32 %v2944_v1, %v1053_v5 }
 0x29c   : > { %v1061_v7 = vsub.f32 %v2944_v1, %v2957_v6  ;;  %1609 = vst.msk [vmem:[#allocation2 + $0x18] sm:$0xff] %vm415_vm2, %v2957_v6  ;;  %1136 = vrot.lane.b32.xlu1 %v1131_v62, %s2527_s12 }
 0x2a0   : > { %1139 = vrot.lane.b32.xlu1 %v1131_v62, %s2525_s14 }
 0x2a4   : > { %1082 = vperm.xlu1 %2283, %v2939_v63   ;;  %v1104_v63 = vld [vmem:[#allocation3 + $0x10] sm:$0xff] }
 0x2a8   : > { %1087 = vperm.xlu1 %2283, %v2957_v6  }
 0x313   : > { %v1073_v8 = vpop.permute.xlu1 %1072 }
 0x314   : > { %v1090_v9 = vsub.f32 %v807_v39, %v1073_v8 }
 0x316   : > { %v1094_v10 = vmul.f32 1.442695, %v1090_v9 }
 0x317   : > { %v1078_v11 = vpop.permute.xlu0 %1077  ;;  %v1134_v12 = vpop.permute.xlu1 %1133 }
 0x318   : > { %2285 = vpow2.f32 %v1094_v10  ;;  %v1091_v13 = vsub.f32 %v883_v45, %v1078_v11 }
 0x31a   : > { %v1096_v15 = vmul.f32 1.442695, %v1091_v13 }
 0x31b   : > { %v1137_v16 = vpop.permute.xlu1 %1136 }
 0x31c   : > { %2287 = vpow2.f32 %v1096_v15  ;;  %v1142_v17 = vcombine.low %v1131_v62, %v1137_v16  ;;  %v1143_v18 = vcombine.high %v1131_v62, %v1137_v16  ;;  %v1068_v15 = vmul.f32 1.442695, %v1061_v7 }
 0x31d   : > { %v1064_v7 = vmul.f32 1.442695, %v1059_v4 }
 0x31e   : > { %v1150_v24 = vrot.slane %v1142_v17, %v2837_v14  ;;  %v1157_v25 = vrot.slane %v1143_v18, %v2837_v14  ;;  %v1066_v17 = vmul.f32 1.442695, %v1060_v2 }
 0x31f   : > { %v1140_v19 = vpop.permute.xlu1 %1139 }
 0x320   : > { %v1158_v20 = vcombine.low %v1134_v12, %v1140_v19  ;;  %v1159_v22 = vcombine.high %v1134_v12, %v1140_v19 }
 0x322   : > { %v2286_v23 = vpop.eup %2285  ;;  %v1166_v26 = vrot.slane %v1158_v20, %v2837_v14  ;;  %v1173_v27 = vrot.slane %v1159_v22, %v2837_v14 }
 0x323   : > { %v1083_v28 = vpop.permute.xlu1 %1082  ;;  %v1110_v29 = vsel %vm424_vm0, %v2286_v23, 0.0 }
 0x324   : > { %v1174_v30 = vcombine.low %v1150_v24, %v1166_v26  ;;  %v1175_v31 = vcombine.high %v1150_v24, %v1166_v26  ;;  %v1190_v32 = vcombine.low %v1157_v25, %v1173_v27  ;;  %v1191_v33 = vcombine.high %v1157_v25, %v1173_v27  ;;  %1111 = vadd.xlane.f32.xlu1 %v1110_v29  ;;  %v1103_v24 = vld [vmem:[#allocation3 + $0x8] sm:$0xff] }
 0x325   : > { %v1092_v34 = vsub.f32 %v2912_v42, %v1083_v28  ;;  %v1105_v28 = vld [vmem:[#allocation3 + $0x18] sm:$0xff] }
 0x326   : > { %v2288_v35 = vpop.eup %2287  ;;  %v1182_v36 = vrot.slane %v1174_v30, %v2839_v21  ;;  %v1189_v37 = vrot.slane %v1175_v31, %v2839_v21  ;;  %v1198_v38 = vrot.slane %v1190_v32, %v2839_v21  ;;  %v1205_v39 = vrot.slane %v1191_v33, %v2839_v21 }
 0x327   : > { %v1098_v40 = vmul.f32 1.442695, %v1092_v34  ;;  %v1088_v41 = vpop.permute.xlu1 %1087  ;;  %v1113_v43 = vsel %vm424_vm0, %v2288_v35, 0.0 }
 0x328   : > { %v1210_v44 = vcombine.low %v1182_v36, %v1189_v37  ;;  %v2093_v45 = vcombine.high %v1182_v36, %v1189_v37  ;;  %v1226_v46 = vcombine.low %v1198_v38, %v1205_v39  ;;  %v2094_v47 = vcombine.high %v1198_v38, %v1205_v39  ;;  %1114 = vadd.xlane.f32.xlu0 %v1113_v43  ;;  %v1806_v39 = vld [vmem:[#allocation12] sm:$0xff] }
 0x329   : > { %2289 = vpow2.f32 %v1098_v40  ;;  %v1093_v42 = vsub.f32 %v2918_v50, %v1088_v41  ;;  %v1062_v50 = vmul.f32 1.442695, %v1058_v59  ;;  %v1807_v40 = vld [vmem:[#allocation12 + $0x8] sm:$0xff]  ;;  %v2534_v41 = vmov 0.0|0.0  }
 0x32a   : > { %v1217_v48 = vrot.slane %v1210_v44, %v2837_v14  ;;  %v1225_v49 = vrot.slane %v2093_v45, %v2837_v14  ;;  %v1233_v51 = vrot.slane %v1226_v46, %v2837_v14  ;;  %v1241_v52 = vrot.slane %v2094_v47, %v2837_v14  ;;  %v1570_v46 = vld [vmem:[#allocation4] sm:$0xff]  ;;  %v1571_v47 = vld [vmem:[#allocation4 + $0x8] sm:$0xff] }
 0x32b   : > { %v1100_v53 = vmul.f32 1.442695, %v1093_v42  ;;  %v2180_v43 = vpack.c.bf16 %v1807_v40, %v1806_v39 }
 0x32c   : > { %v1242_v55 = vcombine.low %v1217_v48, %v1225_v49  ;;  %v1258_v60 = vcombine.low %v1233_v51, %v1241_v52  ;;  %v1243_v61 = vcombine.high %v1217_v48, %v1225_v49  ;;  %v1259_v62 = vcombine.high %v1233_v51, %v1241_v52  ;;  %v1572_v52 = vld [vmem:[#allocation4 + $0x10] sm:$0xff] }
 0x32d   : > { %2291 = vpow2.f32 %v1100_v53 }
 0x32e   : > { %v1250_v5 = vrot.slane %v1242_v55, %v2839_v21  ;;  %v1266_v8 = vrot.slane %v1258_v60, %v2839_v21  ;;  %v1257_v9 = vrot.slane %v1243_v61, %v2839_v21  ;;  %v1273_v10 = vrot.slane %v1259_v62, %v2839_v21  ;;  %v1573_v60 = vld [vmem:[#allocation4 + $0x18] sm:$0xff] }
 0x32f   : > { %2293 = vpow2.f32 %v1062_v50 }
 0x330   : > { %v1274_v11 = vcombine.low %v1250_v5, %v1266_v8  ;;  %v1275_v12 = vcombine.high %v1250_v5, %v1266_v8  ;;  %v1276_v54 = vcombine.low %v1257_v9, %v1273_v10  ;;  %v1277_v56 = vcombine.high %v1257_v9, %v1273_v10 }
 0x331   : > { %2295 = vpow2.f32 %v1068_v15 }
 0x332   : > { %2149 = vmatpush3.msra.mxu0 %v1274_v11  ;;  %2154 = vmatpush3.msra.mxu1 %v1275_v12  ;;  %2297 = vpow2.f32 %v1064_v7 }
 0x333   : > { %v2290_v13 = vpop.eup %2289  ;;  %2151 = vmatmul.mubr.msk.f32.vlgmr.msra.gmra.mrb[2].mxu0 %vm424_vm0, %v2286_v23  ;;  %2156 = vmatmul.mubr.msk.f32.vlgmr.msra.gmra.mrb[6].mxu1 %vm424_vm0, %v2288_v35  ;;  %2299 = vpow2.f32 %v1066_v17 }
 0x334   : > { %2158 = vmatprep.subr.mxu0 %v2528_v3  ;;  %2163 = vmatprep.subr.mxu1 %v2528_v3  ;;  %v1116_v59 = vsel %vm424_vm0, %v2290_v13, 0.0 }
 0x335   : > { %2159 = vmatpush3.msra.mxu0 %v1276_v54  ;;  %2164 = vmatpush3.msra.mxu1 %v1277_v56 }
 0x336   : > { %1117 = vadd.xlane.f32.xlu1 %v1116_v59  ;;  %2160 = vmatprep.mubr.msk.f32.mxu0 %vm2529_vm1, %v2528_v3 }
 0x337   : > { %v2292_v1 = vpop.eup %2291  ;;  %2165 = vmatprep.mubr.msk.f32.mxu1 %vm2529_vm1, %v2528_v3  ;;  %2161 = vmatmul.mubr.msk.f32.vlgmr.msra.gmra.mrb[4].mxu0 %vm424_vm0, %v2290_v13 }
 0x338   : > { %2166 = vmatmul.mubr.msk.f32.vlgmr.msra.gmra.mrb[8].mxu1 %vm424_vm0, %v2292_v1  ;;  %v1119_v6 = vsel %vm424_vm0, %v2292_v1, 0.0  ;;  %2176 = vmatprep.mubr.msk.f32.mxu0 %vm2529_vm1, %v2528_v3  ;;  %v1102_v3 = vld [vmem:[#allocation3] sm:$0xff] }
 0x339   : > { %v2294_v16 = vpop.eup %2293  ;;  %2179 = vmatprep.subr.bf16.mxu0 %v2534_v41 }
 0x33a   : > { %1120 = vadd.xlane.f32.xlu1 %v1119_v6  ;;  %v1106_v22 = vmul.f32 %v2294_v16, %v1102_v3  ;;  %2181 = vmatpush3.bf16.msra.mxu0 %v2180_v43 }
 0x33b   : > { %v2296_v18 = vpop.eup %2295  ;;  %2182 = vmatprep.subr.bf16.mxu0 %v2534_v41 }
 0x33c   : > { %v2298_v19 = vpop.eup %2297  ;;  %v1109_v31 = vmul.f32 %v2296_v18, %v1105_v28 }
 0x33d   : > { %v2300_v20 = vpop.eup %2299  ;;  %v1107_v0 = vmul.f32 %v2298_v19, %v1103_v24 }
 0x33e   : > { %1576 = vperm.xlu0 %2284, %v2294_v16   ;;  %v1108_v26 = vmul.f32 %v2300_v20, %v1104_v63 }
 0x342   : > { %1591 = vperm.xlu0 %2284, %v2296_v18  }
 0x34b   : > { %1581 = vperm.xlu1 %2283, %v2298_v19  }
 0x34f   : > { %1586 = vperm.xlu1 %2283, %v2300_v20  }
 0x3b1   : > { %v1112_v23 = vpop.xlane.xlu1 %1111 }
 0x3b2   : > { %v1122_v58 = vadd.f32 %v1112_v23, %v1106_v22 }
 0x3b4   : > { %1127 = vst.msk [vmem:[#allocation3] sm:$0xff] %vm415_vm2, %v1122_v58 }
 0x3b5   : > { %v1115_v4 = vpop.xlane.xlu0 %1114 }
 0x3b6   : > { %v1123_v25 = vadd.f32 %v1115_v4, %v1107_v0 }
 0x3b8   : > { %1128 = vst.msk [vmem:[#allocation3 + $0x8] sm:$0xff] %vm415_vm2, %v1123_v25 }
 0x3bb   : > { %v1613_v57 = vld [vmem:[#allocation3] sm:$0xff] }
 0x3bc   : > { %2301 = vrcp.f32 %v1613_v57 }
 0x3bd   : > { %v1577_v44 = vpop.permute.xlu0 %1576 }
 0x3be   : > { %v1594_v42 = vmul.f32 %v1577_v44, %v1570_v46 }
 0x3bf   : > { %v1614_v2 = vld [vmem:[#allocation3 + $0x8] sm:$0xff] }
 0x3c0   : > { %2303 = vrcp.f32 %v1614_v2 }
 0x3c1   : > { %v1592_v48 = vpop.permute.xlu0 %1591 }
 0x3c2   : > { %v1597_v9 = vmul.f32 %v1592_v48, %v1573_v60 }
 0x3c3   : > { %v1118_v27 = vpop.xlane.xlu1 %1117 }
 0x3c4   : > { %v1124_v29 = vadd.f32 %v1118_v27, %v1108_v26 }
 0x3c6   : > { %v2302_v30 = vpop.eup %2301  ;;  %1129 = vst.msk [vmem:[#allocation3 + $0x10] sm:$0xff] %vm415_vm2, %v1124_v29  ;;  %v1808_v29 = vld [vmem:[#allocation12 + $0x10] sm:$0xff] }
 0x3c7   : > { %v1121_v32 = vpop.xlane.xlu1 %1120  ;;  %1631 = vperm.xlu1 %2283, %v2302_v30   ;;  %v1809_v30 = vld [vmem:[#allocation12 + $0x18] sm:$0xff] }
 0x3c8   : > { %v1125_v33 = vadd.f32 %v1121_v32, %v1109_v31  ;;  %v2183_v31 = vpack.c.bf16 %v1809_v30, %v1808_v29 }
 0x3ca   : > { %v2304_v34 = vpop.eup %2303  ;;  %1130 = vst.msk [vmem:[#allocation3 + $0x18] sm:$0xff] %vm415_vm2, %v1125_v33  ;;  %2184 = vmatpush3.bf16.msra.mxu0 %v2183_v31 }
 0x3cb   : > { %1636 = vperm.xlu0 %2284, %v2304_v34   ;;  %v1582_v45 = vpop.permute.xlu1 %1581 }
 0x3cc   : > { %v1595_v49 = vmul.f32 %v1582_v45, %v1571_v47 }
 0x3cd   : > { %v1615_v35 = vld [vmem:[#allocation3 + $0x10] sm:$0xff] }
 0x3ce   : > { %2305 = vrcp.f32 %v1615_v35 }
 0x3cf   : > { %v1587_v51 = vpop.permute.xlu1 %1586 }
 0x3d0   : > { %v1596_v50 = vmul.f32 %v1587_v51, %v1572_v52 }
 0x3d1   : > { %v1616_v36 = vld [vmem:[#allocation3 + $0x18] sm:$0xff] }
 0x3d2   : > { %2307 = vrcp.f32 %v1616_v36 }
 0x3d8   : > { %v2306_v37 = vpop.eup %2305 }
 0x3d9   : > { %1641 = vperm.xlu1 %2283, %v2306_v37  }
 0x3dc   : > { %v2308_v38 = vpop.eup %2307 }
 0x3dd   : > { %1646 = vperm.xlu0 %2284, %v2308_v38  }
 0x406   : > { %v1347_v53 = vpop.f32.mrb[2].mxu0  ;;  %v1420_v55 = vpop.f32.mrb[6].mxu1 }
 0x407   : > { %v1598_v61 = vadd.f32 %v1594_v42, %v1347_v53  ;;  %v1599_v62 = vadd.f32 %v1595_v49, %v1420_v55  ;;  %v2152_v5 = vpop.f32.mrb[3].mxu0  ;;  %v2157_v8 = vpop.f32.mrb[7].mxu1 }
 0x409   : > { %1602 = vst.msk [vmem:[#allocation4] sm:$0xff] %vm424_vm0, %v1598_v61  ;;  %1603 = vst.msk [vmem:[#allocation4 + $0x8] sm:$0xff] %vm424_vm0, %v1599_v62 }
 0x40a   : > { %v1493_v10 = vpop.f32.mrb[4].mxu0 }
 0x40b   : > { %v1600_v11 = vadd.f32 %v1596_v50, %v1493_v10  ;;  %v1566_v12 = vpop.f32.mrb[8].mxu1  ;;  %v2162_v13 = vpop.f32.mrb[5].mxu0 }
 0x40c   : > { %v1601_v15 = vadd.f32 %v1597_v9, %v1566_v12  ;;  %v2167_v54 = vpop.f32.mrb[9].mxu1  ;;  %v2101_v9 = vld [vmem:[%s3149_s28] ss:$0 sm:$0xff] }
 0x40d   : > { %1604 = vst.msk [vmem:[#allocation4 + $0x10] sm:$0xff] %vm424_vm0, %v1600_v11 }
 0x40e   : > { %1605 = vst.msk [vmem:[#allocation4 + $0x18] sm:$0xff] %vm424_vm0, %v1601_v15 }
 0x410   : > { %v1625_v16 = vld [vmem:[#allocation4] sm:$0xff]  ;;  %v1626_v18 = vld [vmem:[#allocation4 + $0x8] sm:$0xff] }
 0x414   : > { %v1627_v1 = vld [vmem:[#allocation4 + $0x10] sm:$0xff] }
 0x415   : > { %v1628_v19 = vld [vmem:[#allocation4 + $0x18] sm:$0xff] }
 0x446   : > { %v1632_v56 = vpop.permute.xlu1 %1631 }
 0x447   : > { %v1649_v17 = vmul.f32 %v1632_v56, %v1625_v16 }
 0x44a   : > { %v1637_v59 = vpop.permute.xlu0 %1636 }
 0x44b   : > { %v1650_v3 = vmul.f32 %v1637_v59, %v1626_v18 }
 0x458   : > { %v1642_v6 = vpop.permute.xlu1 %1641 }
 0x459   : > { %v1651_v7 = vmul.f32 %v1642_v6, %v1627_v1 }
 0x45b   : > { %v1653_v22 = vcombine.low %v1649_v17, %v1651_v7  ;;  %v1654_v23 = vcombine.high %v1649_v17, %v1651_v7 }
 0x45c   : > { %v1647_v20 = vpop.permute.xlu0 %1646 }
 0x45d   : > { %v1652_v24 = vmul.f32 %v1647_v20, %v1628_v19  ;;  %v1661_v4 = vrot.slane %v1653_v22, %v2837_v14  ;;  %v1668_v25 = vrot.slane %v1654_v23, %v2837_v14 }
 0x45f   : > { %v1669_v58 = vcombine.low %v1650_v3, %v1652_v24  ;;  %v1670_v0 = vcombine.high %v1650_v3, %v1652_v24 }
 0x461   : > { %v1677_v57 = vrot.slane %v1669_v58, %v2837_v14  ;;  %v1684_v63 = vrot.slane %v1670_v0, %v2837_v14 }
 0x463   : > { %v1685_v2 = vcombine.low %v1661_v4, %v1677_v57  ;;  %v1686_v26 = vcombine.high %v1661_v4, %v1677_v57  ;;  %v1701_v27 = vcombine.low %v1668_v25, %v1684_v63  ;;  %v1702_v28 = vcombine.high %v1668_v25, %v1684_v63 }
 0x465   : > { %v1693_v32 = vrot.slane %v1685_v2, %v2839_v21  ;;  %v1700_v33 = vrot.slane %v1686_v26, %v2839_v21  ;;  %v1709_v34 = vrot.slane %v1701_v27, %v2839_v21  ;;  %v1716_v35 = vrot.slane %v1702_v28, %v2839_v21 }
 0x467   : > { %v1721_v36 = vcombine.low %v1693_v32, %v1700_v33  ;;  %v2099_v37 = vcombine.high %v1693_v32, %v1700_v33  ;;  %v1737_v38 = vcombine.low %v1709_v34, %v1716_v35  ;;  %v2100_v39 = vcombine.high %v1709_v34, %v1716_v35 }
 0x469   : > { %v1728_v40 = vrot.slane %v1721_v36, %v2837_v14  ;;  %v1736_v41 = vrot.slane %v2099_v37, %v2837_v14  ;;  %v1744_v43 = vrot.slane %v1737_v38, %v2837_v14  ;;  %v1752_v44 = vrot.slane %v2100_v39, %v2837_v14 }
 0x46b   : > { %v1754_v45 = vcombine.high %v1728_v40, %v1736_v41  ;;  %v1770_v46 = vcombine.high %v1744_v43, %v1752_v44  ;;  %v1753_v47 = vcombine.low %v1728_v40, %v1736_v41  ;;  %v1769_v42 = vcombine.low %v1744_v43, %v1752_v44 }
 0x46d   : > { %v1768_v48 = vrot.slane %v1754_v45, %v2839_v21  ;;  %v1784_v49 = vrot.slane %v1770_v46, %v2839_v21  ;;  %v1761_v51 = vrot.slane %v1753_v47, %v2839_v21  ;;  %v1777_v52 = vrot.slane %v1769_v42, %v2839_v21 }
 0x46f   : > { %v1787_v53 = vcombine.low %v1768_v48, %v1784_v49  ;;  %v1786_v55 = vcombine.high %v1761_v51, %v1777_v52  ;;  %v1785_v60 = vcombine.low %v1761_v51, %v1777_v52  ;;  %v1788_v14 = vcombine.high %v1768_v48, %v1784_v49 }
 0x471   : > { %1794 = vrot.lane.b32.xlu0 %v1787_v53, %s2535_s10  ;;  %1790 = vrot.lane.b32.xlu1 %v1786_v55, %s2536_s16 }
 0x475   : > { %1798 = vrot.lane.b32.xlu1 %v1788_v14, %s2537_s11 }
 0x4e3   : > { %v1791_v61 = vpop.permute.xlu1 %1790  ;;  %v1795_v62 = vpop.permute.xlu0 %1794 }
 0x4e4   : > { %v1801_v5 = vsel %vm424_vm0, %v1785_v60, %v1791_v61 }
 0x4e5   : > { %v1803_v8 = vsel %vm1802_vm3, %v1801_v5, %v1795_v62 }
 0x4e7   : > { %v1799_v21 = vpop.permute.xlu1 %1798 }
 0x4e8   : > { %v1805_v50 = vsel %vm1804_vm4, %v1803_v8, %v1799_v21 }
 0x4e9   : > { %2177 = vmatmul.mubr.msk.f32.vlgmr.msra.gmra.mrb[6].mxu0 %vm1817_vm5, %v1805_v50 }
 0x5bc   : > { %v1887_v10 = vpop.f32.mrb[6].mxu0 }
 0x5bd   : > { %v1888_v11 = vadd.f32 %v2101_v9, %v1887_v10  ;;  %v2178_v12 = vpop.f32.mrb[7].mxu0 }
 0x5bf   : > { %1891 = vst.msk [vmem:[%s403_s8] sm:$0xff] %vm1817_vm5, %v1888_v11 }
 0x5c0   : > { %2440 = shalt.err (!%p2437_p12)
}
 0x5c1   : > { %s2441_s19 = scalar_lea.hbm %s3046_s9, 128  ;;  %s2445_s12 = scalar_lea.hbm %s3150_s5, 256 }
 0x5c2   : > { %p2442_p0 = scmp.ne.s32.totalorder %s3046_s9, %s2441_s19  ;;  %p2446_p9 = scmp.lt.u32.totalorder %s3046_s9, %s3150_s5 }
 0x5c3   : > { %p2447_p4 = scmp.lt.u32.totalorder %s2445_s12, %s2441_s19  ;;  %p2449_p5 = scmp.lt.u32.totalorder %s2441_s19, %s3046_s9 }
 0x5c4   : > { %p2443_p11 = pnand %p2442_p0, %p3151_p10 }
 0x5c5   : > { %p2448_p2 = por %p2447_p4, %p2446_p9 }
 0x5c6   : > { %p2444_p1 = pneg %p2443_p11 }
 0x5c7   : > { %p2450_p13 = por %p2449_p5, %p2448_p2 }
 0x5c9   : > { %p2451_p7 = pnand %p2450_p13, %p2444_p1 }
 0x5cb   : > { %2454 = shalt.err (!%p2451_p7)
}
 0x5cc   : > { %2195 = dma.vmem_to_hbm [thread:$0]  (%p3151_p10), %s3048_s1, 128, %s3046_s9, %s1893_s17  }
 0x5cd PF: > { %s3152_s10 = sld [smem:[#allocation19_spill]]  ;;  %s3153_s16 = sld [smem:[#allocation25_spill]] }
 0x5ce   : > { %s3154_s11 = sld [smem:[#allocation21_spill]] }
 0x5d3   : > { %s1919_s27 = sand.u32 1, %s3152_s10   ;;  %p3155_p3 = scmp.ne.s32.totalorder %s3153_s16, 0 }
 0x5d4   : > { %p3156_p6 = scmp.ge.s32.totalorder %s3154_s11, 2  ;;  %s1920_s30 = scalar_lea.sflag [#allocation8], %s1919_s27 }
 0x5d6   : > { %p2212_p8 = pnand %p3156_p6, %p3155_p3 }
 0x5d8   : > { %2492 = dma.done.wait (!%p2212_p8), %s1920_s30, 128  }
 0x5d9   : > { %2494 = vsyncadd (!%p2212_p8), %s1920_s30, 4294967168  ;;  %s26_s26 = sadd.s32 1, %s3154_s11   ;;  %s3157_s29 = sld [smem:[#allocation23_spill]] }
 0x5da   : > { %p23_p12 = scmp.ge.s32.totalorder %s26_s26, 4   ;;  %s3158_s24 = sld [smem:[#allocation20_spill]] }
 0x5db   : > { %s3159_s25 = sld [smem:[#allocation22_spill]]  ;;  %s3160_s21 = smov %s2501_s22 }
 0x5dc   : > { %s3161_s22 = smov %s2505_s23  ;;  %25 = sbr.rel (!%p23_p12) target bundleno = 13 (0xd), region = 128 }
 0x5df   : > { %s3162_s23 = smov %s3157_s29 }
 0x5e3   :  { %1925 = vsyncpa [#allocation7], 1 }
 0x5e4   :  { %1927 = vsyncpa [#allocation7 + $0x1], 1 }
 0x5e5   :  { %1928 = vsyncpa [#allocation10], 1 }
 0x5e6   :  { %1930 = vsyncpa [#allocation10 + $0x1], 1 }
 0x5e7   :  { %1931 = vsyncpa [#allocation13], 1 }
 0x5e8   :  { %1932 = vsyncpa [#allocation8], 1 }
 0x5e9   :  { %1934 = vsyncpa [#allocation8 + $0x1], 1 }

</bundles_post_ra>
